<compile_context>
chip_gen: v7x
topology: tpu7x:2x2x1
jax: 0.10.0
libtpu: 0.0.40
codegen_flags: <defaults>
</compile_context>

<pallas_src>
import jax
import jax.numpy as jnp
from jax.experimental import pallas as pl
from jax.experimental.pallas import tpu as pltpu


def _round_up(x, m):
    return ((x + m - 1) // m) * m


def _tile_defaults():
    """Per-generation (tm, tn, tk, vmem_limit_bytes, split_m_for_cores)."""
    try:
        kind = jax.devices()[0].device_kind.lower()
    except Exception:
        kind = ""
    if "v7" in kind:
        # v7x: 2 TCs/chip, 64 MiB VMEM per TC, ~310 FLOP/byte roofline.
        return 512, 1024, 512, 48 << 20, True
    if "v6" in kind:
        # v6e: 918 TF/s bf16 vs ~1.4 TB/s HBM -> needs big M/N tiles.
        return 1024, 2048, 512, 100 << 20, False
    # v5e (and unknown): ~240 FLOP/byte roofline; deep K cuts grid-step count.
    return 512, 512, 1024, 48 << 20, False


def _pick_k_tile(K, max_tk):
    """Multiple of 128, <= max_tk, preferring one that divides round_up(K,128)
    so the activation needs no K padding (floor at max_tk//4)."""
    d = _round_up(K, 128)
    t = max(128, (min(max_tk, d) // 128) * 128)
    floor = max(128, (max_tk // 4 // 128) * 128)
    tt = t
    while tt >= floor:
        if d % tt == 0:
            return tt
        tt -= 128
    return t


def dense_sigmoid_kernel(x_ref, w_ref, b_ref, o_ref):
    k = pl.program_id(2)
    # MXU matmul: bf16 operands, f32 accumulation.
    p = jnp.dot(x_ref[...], w_ref[...], preferred_element_type=jnp.float32)

    @pl.when(k == 0)
    def _():
        o_ref[...] = p           # first partial product: no zero-init pass

    @pl.when(k > 0)
    def _():
        o_ref[...] += p          # accumulate directly into the f32 output block

    @pl.when(k == pl.num_programs(2) - 1)
    def _():
        z = o_ref[...] + b_ref[...]
        # sigmoid(z) == 0.5 * (tanh(z/2) + 1): single EUP transcendental.
        o_ref[...] = 0.5 * (jnp.tanh(0.5 * z) + 1.0)


def pack_params(w, b, *, tn, tk):
    """One-time prep: cast W (K, N) to bf16, b to f32 row, zero-pad to tile
    multiples. Returns (w_padded, b_padded, n_out, TN, TK)."""
    K, N = w.shape
    TN = min(tn, _round_up(N, 128))
    TK = _pick_k_tile(K, tk)
    Kp, Np = _round_up(K, TK), _round_up(N, TN)

    w16 = w.astype(jnp.bfloat16)
    if (Kp, Np) != (K, N):
        w16 = jnp.pad(w16, ((0, Kp - K), (0, Np - N)))
    b32 = b.reshape(1, N).astype(jnp.float32)
    if Np != N:
        b32 = jnp.pad(b32, ((0, 0), (0, Np - N)))
    return w16, b32, N, TN, TK


def dense_sigmoid_packed(x, w_pad, b_pad, n_out, *, tn_tile, tk_tile,
                         tm=None, vmem_limit=None, split_m_for_cores=False):
    """x: (M, K) any float dtype; w_pad: (Kp, Np) bf16; b_pad: (1, Np) f32."""
    M, K = x.shape
    Kp, Np = w_pad.shape
    assert K <= Kp and Kp % tk_tile == 0 and Np % tn_tile == 0

    tm_d, _, _, vlim_d, _ = _tile_defaults()
    tm = tm_d if tm is None else tm
    vmem_limit = vlim_d if vmem_limit is None else vmem_limit

    TN, TK = tn_tile, tk_tile
    # TM multiple of 16 so bf16 x-blocks respect (16, 128) sublane packing.
    TM = min(tm, _round_up(M, 16))
    Mp = _round_up(M, TM)

    # On v7x, make sure there are >=2 parallel output blocks so the second
    # TensorCore is not idle (split along M; keeps the prepacked W/b padding).
    if split_m_for_cores and Mp // TM == 1 and Np // TN == 1 and TM % 32 == 0:
        TM //= 2
        Mp = _round_up(M, TM)

    x16 = x if x.dtype == jnp.bfloat16 else x.astype(jnp.bfloat16)
    if (Mp, Kp) != (M, K):
        x16 = jnp.pad(x16, ((0, Mp - M), (0, Kp - K)))

    grid = (Mp // TM, Np // TN, Kp // TK)

    out = pl.pallas_call(
        dense_sigmoid_kernel,
        out_shape=jax.ShapeDtypeStruct((Mp, Np), jnp.float32),
        grid_spec=pltpu.PrefetchScalarGridSpec(
            num_scalar_prefetch=0,
            grid=grid,
            in_specs=[
                pl.BlockSpec((TM, TK), lambda i, j, k: (i, k)),
                pl.BlockSpec((TK, TN), lambda i, j, k: (k, j)),
                pl.BlockSpec((1, TN), lambda i, j, k: (0, j)),
            ],
            out_specs=pl.BlockSpec((TM, TN), lambda i, j, k: (i, j)),
        ),
        compiler_params=pltpu.CompilerParams(
            dimension_semantics=("parallel", "parallel", "arbitrary"),
            vmem_limit_bytes=vmem_limit),
    )(x16, w_pad, b_pad)

    if (Mp, Np) != (M, n_out):
        out = out[:M, :n_out]
    return out


def dense_sigmoid(x, w, b):
    """Convenience path: x (M, K), w (K, N), b (N,) -> sigmoid(x @ w + b)."""
    tm, tn, tk, vlim, split = _tile_defaults()
    w_pad, b_pad, n_out, TN, TK = pack_params(w, b, tn=tn, tk=tk)
    return dense_sigmoid_packed(x, w_pad, b_pad, n_out, tn_tile=TN, tk_tile=TK,
                                tm=tm, vmem_limit=vlim, split_m_for_cores=split)


class Layer:
    """JAX/Pallas equivalent of the PyTorch Layer (Linear + sigmoid)."""

    def __init__(self, input_size, output_size, key):
        kw, kb = jax.random.split(key)
        bound = 1.0 / (input_size ** 0.5)
        # Weight stored as (in, out) so the kernel computes x @ W directly.
        self.weight = jax.random.uniform(
            kw, (input_size, output_size), jnp.float32, -bound, bound)
        self.bias = jax.random.uniform(
            kb, (output_size,), jnp.float32, -bound, bound)
        # Prepack once (bf16 cast + zero-pad to tile multiples): removes a full
        # per-call HBM pass over the weight.
        self._tm, tn, tk, self._vlim, self._split = _tile_defaults()
        (self._w_pad, self._b_pad, self._n_out,
         self._tn_tile, self._tk_tile) = pack_params(
            self.weight, self.bias, tn=tn, tk=tk)

    def __call__(self, x):
        return dense_sigmoid_packed(
            x, self._w_pad, self._b_pad, self._n_out,
            tn_tile=self._tn_tile, tk_tile=self._tk_tile,
            tm=self._tm, vmem_limit=self._vlim,
            split_m_for_cores=self._split)


if __name__ == "__main__":
    key = jax.random.PRNGKey(0)
    k_in, k_params = jax.random.split(key)

    batch, input_size, output_size = 8, 32, 16
    x = jax.random.normal(k_in, (batch, input_size), jnp.float32)

    layer = Layer(input_size, output_size, k_params)
    out = layer(x)
    out = jax.block_until_ready(out)

    # Reference with matching bf16 operands / f32 accumulation.
    ref_bf16 = jax.nn.sigmoid(
        jnp.dot(x.astype(jnp.bfloat16), layer.weight.astype(jnp.bfloat16),
                preferred_element_type=jnp.float32) + layer.bias)
    # Full-precision reference (loose tolerance due to bf16 operand rounding).
    ref_f32 = jax.nn.sigmoid(x @ layer.weight + layer.bias)

    assert out.shape == (batch, output_size)
    assert out.dtype == jnp.float32
    assert jnp.allclose(out, ref_bf16, atol=1e-5, rtol=1e-5)
    assert jnp.allclose(out, ref_f32, atol=2e-2, rtol=2e-2)

    print("KERNEL_OK")
</pallas_src>

<mosaic_0001>
module attributes {stable_mosaic.version = 11 : i64} {
  func.func @dense_sigmoid_kernel(%arg0: i32, %arg1: i32, %arg2: i32, %arg3: memref<16x128xbf16, #tpu.memory_space<vmem>>, %arg4: memref<128x128xbf16, #tpu.memory_space<vmem>>, %arg5: memref<1x128xf32, #tpu.memory_space<vmem>>, %arg6: memref<16x128xf32, #tpu.memory_space<vmem>>) attributes {dimension_semantics = [#tpu.dimension_semantics<parallel>, #tpu.dimension_semantics<parallel>, #tpu.dimension_semantics<arbitrary>], iteration_bounds = array<i64: 1, 1, 1>, scalar_prefetch = 0 : i64, scratch_operands = 0 : i64, tpu.core_type = #tpu.core_type<tc>, window_params = [{transform_indices = @transform_0, window_bounds = array<i64: 16, 128>}, {transform_indices = @transform_1, window_bounds = array<i64: 128, 128>}, {transform_indices = @transform_2, window_bounds = array<i64: 1, 128>}, {transform_indices = @transform_3, window_bounds = array<i64: 16, 128>}]} {
    %c0 = arith.constant 0 : index
    %c0_0 = arith.constant 0 : index
    %0 = vector.load %arg3[%c0, %c0_0] : memref<16x128xbf16, #tpu.memory_space<vmem>>, vector<16x128xbf16>
    %c0_1 = arith.constant 0 : index
    %c0_2 = arith.constant 0 : index
    %1 = vector.load %arg4[%c0_1, %c0_2] : memref<128x128xbf16, #tpu.memory_space<vmem>>, vector<128x128xbf16>
    %cst = arith.constant dense<0.000000e+00> : vector<16x128xf32>
    %2 = tpu.matmul %0, %1, %cst {dimension_numbers = #tpu.dot_dimension_numbers<[1], [0], [0], [1], [0, 0, 1, 1], [], []>} : vector<16x128xbf16>, vector<128x128xbf16>, vector<16x128xf32> -> vector<16x128xf32>
    %c0_i32 = arith.constant 0 : i32
    %3 = arith.cmpi eq, %arg2, %c0_i32 : i32
    %4 = arith.extui %3 : i1 to i32
    %c0_i32_3 = arith.constant 0 : i32
    %5 = arith.cmpi ne, %4, %c0_i32_3 : i32
    scf.if %5 {
      %c0_8 = arith.constant 0 : index
      %c0_9 = arith.constant 0 : index
      %12 = vector.load %arg6[%c0_8, %c0_9] : memref<16x128xf32, #tpu.memory_space<vmem>>, vector<16x128xf32>
      tpu.vector_store %arg6[%c0_8, %c0_9], %2 {strides = array<i32>} : memref<16x128xf32, #tpu.memory_space<vmem>>, vector<16x128xf32>,
    } else {
    }
    %c0_i32_4 = arith.constant 0 : i32
    %6 = arith.cmpi sgt, %arg2, %c0_i32_4 : i32
    %7 = arith.extui %6 : i1 to i32
    %c0_i32_5 = arith.constant 0 : i32
    %8 = arith.cmpi ne, %7, %c0_i32_5 : i32
    scf.if %8 {
      %c0_8 = arith.constant 0 : index
      %c0_9 = arith.constant 0 : index
      %12 = vector.load %arg6[%c0_8, %c0_9] : memref<16x128xf32, #tpu.memory_space<vmem>>, vector<16x128xf32>
      %13 = arith.addf %12, %2 : vector<16x128xf32>
      %c0_10 = arith.constant 0 : index
      %c0_11 = arith.constant 0 : index
      %14 = vector.load %arg6[%c0_10, %c0_11] : memref<16x128xf32, #tpu.memory_space<vmem>>, vector<16x128xf32>
      tpu.vector_store %arg6[%c0_10, %c0_11], %13 {strides = array<i32>} : memref<16x128xf32, #tpu.memory_space<vmem>>, vector<16x128xf32>,
    } else {
    }
    %c0_i32_6 = arith.constant 0 : i32
    %9 = arith.cmpi eq, %arg2, %c0_i32_6 : i32
    %10 = arith.extui %9 : i1 to i32
    %c0_i32_7 = arith.constant 0 : i32
    %11 = arith.cmpi ne, %10, %c0_i32_7 : i32
    scf.if %11 {
      %c0_8 = arith.constant 0 : index
      %c0_9 = arith.constant 0 : index
      %12 = vector.load %arg6[%c0_8, %c0_9] : memref<16x128xf32, #tpu.memory_space<vmem>>, vector<16x128xf32>
      %c0_10 = arith.constant 0 : index
      %c0_11 = arith.constant 0 : index
      %13 = vector.load %arg5[%c0_10, %c0_11] : memref<1x128xf32, #tpu.memory_space<vmem>>, vector<1x128xf32>
      %14 = vector.broadcast %13 : vector<1x128xf32> to vector<16x128xf32>
      %15 = arith.addf %12, %14 : vector<16x128xf32>
      %cst_12 = arith.constant 5.000000e-01 : f32
      %16 = vector.broadcast %cst_12 : f32 to vector<16x128xf32>
      %17 = arith.mulf %16, %15 : vector<16x128xf32>
      %18 = math.tanh %17 : vector<16x128xf32>
      %cst_13 = arith.constant 1.000000e+00 : f32
      %19 = vector.broadcast %cst_13 : f32 to vector<16x128xf32>
      %20 = arith.addf %18, %19 : vector<16x128xf32>
      %cst_14 = arith.constant 5.000000e-01 : f32
      %21 = vector.broadcast %cst_14 : f32 to vector<16x128xf32>
      %22 = arith.mulf %21, %20 : vector<16x128xf32>
      %c0_15 = arith.constant 0 : index
      %c0_16 = arith.constant 0 : index
      %23 = vector.load %arg6[%c0_15, %c0_16] : memref<16x128xf32, #tpu.memory_space<vmem>>, vector<16x128xf32>
      tpu.vector_store %arg6[%c0_15, %c0_16], %22 {strides = array<i32>} : memref<16x128xf32, #tpu.memory_space<vmem>>, vector<16x128xf32>,
    } else {
    }
    return
  }
  func.func @transform_0(%arg0: i32, %arg1: i32, %arg2: i32) -> (i32, i32) {
    %c0_i32 = arith.constant 0 : i32
    return %arg0, %arg2 : i32, i32
  }
  func.func @transform_1(%arg0: i32, %arg1: i32, %arg2: i32) -> (i32, i32) {
    %c0_i32 = arith.constant 0 : i32
    return %arg2, %arg1 : i32, i32
  }
  func.func @transform_2(%arg0: i32, %arg1: i32, %arg2: i32) -> (i32, i32) {
    %c0_i32 = arith.constant 0 : i32
    %c0_i32_0 = arith.constant 0 : i32
    return %c0_i32, %arg1 : i32, i32
  }
  func.func @transform_3(%arg0: i32, %arg1: i32, %arg2: i32) -> (i32, i32) {
    %c0_i32 = arith.constant 0 : i32
    return %arg0, %arg1 : i32, i32
  }
}

</mosaic_0001>

<bundles_post_ra>
// kernel: tpu_custom_call.1
= control target key start
LH: loop header
LB: loop body
LE: loop exit
PB: predicated region body
PF: predicated region fallthrough
CT: control target
= control target key end

     0   :  { %8 = vsyncpa [#allocation3], 0  ;;  %s416_s0 = inlined_call_operand.hbm [shape: bf16[16,128], index: 0, kind: input, shape index: {}]   ;;  %s417_s1 = inlined_call_operand.hbm [shape: bf16[128,128], index: 1, kind: input, shape index: {}]   ;;  %s418_s2 = inlined_call_operand.vmem [shape: f32[1,128], index: 2, kind: input, shape index: {}]   ;;  %s419_s3 = inlined_call_operand.hbm [shape: f32[16,128], index: 3, kind: output, shape index: {}]  }
   0x1   :  { %9 = vsyncpa [#allocation6], 0 }
   0x2   :  { %10 = vsyncpa [#allocation4], 0  ;;  %s348_s12 = smov [#allocation2]   ;;  %s276_s16 = scalar_lea.hbm %s416_s0, 128 }
   0x3   :  { %s16_s13 = sshll.u32 %s348_s12, 4  ;;  %p277_p0 = scmp.ne.s32.totalorder %s416_s0, %s276_s16  ;;  %s17_s13 = int_to_ptr.vmem [resolvable:$true] %s16_s13 }
   0x4   :  { %p280_p1 = scmp.lt.u32.totalorder %s276_s16, %s416_s0 }
   0x6   :  { %p282_p2 = pnand %p280_p1, %p277_p0 }
   0x8   :  { %285 = shalt.err (!%p282_p2)
}
   0x9   :  { %s286_s21 = scalar_lea.vmem %s17_s13, 128  ;;  %p291_p4 = scmp.lt.s32.totalorder %s17_s13, %s17_s13 }
   0xa   :  { %p287_p3 = scmp.ne.s32.totalorder %s17_s13, %s286_s21  ;;  %p292_p5 = scmp.lt.s32.totalorder %s286_s21, %s286_s21 }
   0xc   :  { %p293_p6 = por %p292_p5, %p291_p4 }
   0xe   :  { %p294_p7 = pnand %p293_p6, %p287_p3 }
  0x10   :  { %297 = shalt.err (!%p294_p7)
}
  0x11   :  { %s349_s22 = smov 64   ;;  %s350_s23 = smov 4  }
  0x12   :  { %22 = dma.hbm_to_vmem [thread:$0]  %s416_s0, 128, %s17_s13, [#allocation3], %s349_s22, %s349_s22, %s350_s23  }
  0x13   :  { %s351_s26 = smov [#allocation5]   ;;  %s298_s30 = scalar_lea.hbm %s417_s1, 1024 }
  0x14   :  { %s28_s27 = sshll.u32 %s351_s26, 4  ;;  %p299_p8 = scmp.ne.s32.totalorder %s417_s1, %s298_s30  ;;  %s29_s27 = int_to_ptr.vmem [resolvable:$true] %s28_s27 }
  0x15   :  { %p302_p9 = scmp.lt.u32.totalorder %s298_s30, %s417_s1 }
  0x17   :  { %p304_p10 = pnand %p302_p9, %p299_p8 }
  0x19   :  { %307 = shalt.err (!%p304_p10)
}
  0x1a   :  { %s308_s8 = scalar_lea.vmem %s29_s27, 1024  ;;  %p313_p12 = scmp.lt.s32.totalorder %s29_s27, %s29_s27 }
  0x1b   :  { %p309_p11 = scmp.ne.s32.totalorder %s29_s27, %s308_s8  ;;  %p314_p13 = scmp.lt.s32.totalorder %s308_s8, %s308_s8 }
  0x1d   :  { %p315_p0 = por %p314_p13, %p313_p12 }
  0x1f   :  { %p316_p1 = pnand %p315_p0, %p309_p11 }
  0x21   :  { %319 = shalt.err (!%p316_p1)
}
  0x22   :  { %34 = dma.hbm_to_vmem [thread:$0]  %s417_s1, 1024, %s29_s27, [#allocation6], %s349_s22, %s349_s22, %s350_s23  }
  0x23   :  { %342 = dma.done.wait [#allocation3], 128  }
  0x24   :  { %343 = vsyncadd [#allocation3], 4294967168 }
  0x25   :  { %344 = dma.done.wait [#allocation6], 1024  }
  0x26   :  { %345 = vsyncadd [#allocation6], 4294966272  ;;  %v352_v0 = vmov 0.0   ;;  %vm353_vm0 = vmmov 0   ;;  %v263_v1 = vld [vmem:[#allocation5] sm:$0xff]   ;;  %v264_v2 = vld [vmem:[#allocation5 + $0x8] sm:$0xff]  }
  0x27   :  { %234 = vmatprep.subr.bf16.mxu0 %v352_v0  ;;  %250 = vmatprep.mubr.msk.bf16.mxu0 %vm353_vm0, %v352_v0  ;;  %v265_v3 = vld [vmem:[#allocation5 + $0x10] sm:$0xff]   ;;  %v266_v4 = vld [vmem:[#allocation5 + $0x18] sm:$0xff]   ;;  %v267_v5 = vld [vmem:[#allocation5 + $0x20] sm:$0xff]   ;;  %s354_s11 = smov [#allocation7]  }
  0x28   :  { %235 = vmatpush3.bf16.msra.mxu0 %v263_v1  ;;  %v268_v6 = vld [vmem:[#allocation5 + $0x28] sm:$0xff]   ;;  %v269_v7 = vld [vmem:[#allocation5 + $0x30] sm:$0xff]   ;;  %v270_v8 = vld [vmem:[#allocation5 + $0x38] sm:$0xff]   ;;  %s202_s12 = sshll.u32 %s354_s11, 4  ;;  %s203_s12 = int_to_ptr.vmem [resolvable:$true] %s202_s12 }
  0x29   :  { %236 = vmatprep.subr.bf16.mxu0 %v352_v0  ;;  %v271_v9 = vld [vmem:[#allocation2] sm:$0xff]   ;;  %p325_p3 = scmp.lt.s32.totalorder %s203_s12, %s203_s12 }
  0x2a   :  { %v224_v10 = vld [vmem:[%s418_s2] ss:$0 sm:$0xff]  ;;  %s320_s2 = scalar_lea.vmem %s203_s12, 256 }
  0x2b   :  { %p321_p2 = scmp.ne.s32.totalorder %s203_s12, %s320_s2  ;;  %p326_p4 = scmp.lt.s32.totalorder %s320_s2, %s320_s2 }
  0x2c   :  { %237 = vmatpush3.bf16.msra.mxu0 %v264_v2 }
  0x2d   :  { %238 = vmatprep.subr.bf16.mxu0 %v352_v0  ;;  %p327_p5 = por %p326_p4, %p325_p3 }
  0x2f   :  { %p328_p6 = pnand %p327_p5, %p321_p2 }
  0x30   :  { %239 = vmatpush3.bf16.msra.mxu0 %v265_v3 }
  0x31   :  { %240 = vmatprep.subr.bf16.mxu0 %v352_v0 }
  0x34   :  { %241 = vmatpush3.bf16.msra.mxu0 %v266_v4 }
  0x35   :  { %242 = vmatprep.subr.bf16.mxu0 %v352_v0 }
  0x38   :  { %243 = vmatpush3.bf16.msra.mxu0 %v267_v5 }
  0x39   :  { %244 = vmatprep.subr.bf16.mxu0 %v352_v0 }
  0x3c   :  { %245 = vmatpush3.bf16.msra.mxu0 %v268_v6 }
  0x3d   :  { %246 = vmatprep.subr.bf16.mxu0 %v352_v0 }
  0x40   :  { %247 = vmatpush3.bf16.msra.mxu0 %v269_v7 }
  0x41   :  { %248 = vmatprep.subr.bf16.mxu0 %v352_v0 }
  0x44   :  { %249 = vmatpush3.bf16.msra.mxu0 %v270_v8 }
  0x47   :  { %251 = vmatmul.mubr.bf16.vlgmr.msra.gmra.mrb[0].mxu0 %v271_v9 }
 0x11a   :  { %v150_v11 = vpop.f32.mrb[0].mxu0 }
 0x11b   :  { %v185_v12 = vadd.f32 %v224_v10, %v150_v11  ;;  %v252_v13 = vpop.f32.mrb[1].mxu0 }
 0x11c   :  { %v153_v14 = vpop.f32.mrb[2].mxu0 }
 0x11d   :  { %v187_v15 = vmul.f32 0.5, %v185_v12  ;;  %v186_v16 = vadd.f32 %v224_v10, %v153_v14  ;;  %v253_v17 = vpop.f32.mrb[3].mxu0 }
 0x11f   :  { %272 = vtanh.f32 %v187_v15  ;;  %v188_v18 = vmul.f32 0.5, %v186_v16 }
 0x121   :  { %274 = vtanh.f32 %v188_v18 }
 0x129   :  { %v273_v19 = vpop.eup %272 }
 0x12a   :  { %v191_v20 = vadd.f32 1.0, %v273_v19 }
 0x12b   :  { %v275_v21 = vpop.eup %274 }
 0x12c   :  { %v193_v22 = vmul.f32 0.5, %v191_v20  ;;  %v192_v23 = vadd.f32 1.0, %v275_v21 }
 0x12e   :  { %195 = vst [vmem:[#allocation7] sm:$0xff] %v193_v22  ;;  %v194_v24 = vmul.f32 0.5, %v192_v23 }
 0x130   :  { %196 = vst [vmem:[#allocation7 + $0x8] sm:$0xff] %v194_v24 }
 0x131   :  { %331 = shalt.err (!%p328_p6)
}
 0x132   :  { %s332_s15 = scalar_lea.hbm %s419_s3, 256 }
 0x133   :  { %p333_p7 = scmp.ne.s32.totalorder %s419_s3, %s332_s15  ;;  %p336_p8 = scmp.lt.u32.totalorder %s332_s15, %s419_s3 }
 0x135   :  { %p338_p9 = pnand %p336_p8, %p333_p7 }
 0x137   :  { %341 = shalt.err (!%p338_p9)
}
 0x138   :  { %s355_s20 = smov 128   ;;  %s356_s21 = smov 8  }
 0x139   :  { %208 = dma.vmem_to_hbm [thread:$0]  %s203_s12, 256, %s419_s3, [#allocation4], %s355_s20, %s355_s20, %s356_s21  }
 0x13a   :  { %346 = dma.done.wait [#allocation4], 256  }
 0x13b   :  { %347 = vsyncadd [#allocation4], 4294967040 }
 0x13c   :  { %212 = vsyncpa [#allocation3], 1 }
 0x13d   :  { %213 = vsyncpa [#allocation6], 1 }
 0x13e   :  { %214 = vsyncpa [#allocation4], 1 }

</bundles_post_ra>
